<compile_context>
chip_gen: v5e
topology: v5e:2x2
jax: 0.10.0
libtpu: 0.0.40
codegen_flags: <defaults>
</compile_context>

<pallas_src>
import functools

import jax
import jax.numpy as jnp
from jax.experimental import pallas as pl
from jax.experimental.pallas import tpu as pltpu

_TB_CAP = 8192  # batch-tile cap: amortizes ~0.35us/step overhead, x tile stays small


def _mlp_kernel(x_ref, w1_ref, b1_ref, w2_ref, b2_ref, w3_ref, b3_ref, o_ref):
    # Layer 1: (tb, x_dim) @ (x_dim, n_h) on the MXU (bf16 operands, f32 acc);
    # bias add + ReLU stay f32 on the VPU.
    h1 = jnp.dot(x_ref[...], w1_ref[...], preferred_element_type=jnp.float32)
    h1 = jnp.maximum(h1 + b1_ref[...], 0.0)
    # Layer 2: cast the activation back to the weight dtype for the MXU; f32 epilogue.
    h2 = jnp.dot(h1.astype(w2_ref.dtype), w2_ref[...],
                 preferred_element_type=jnp.float32)
    h2 = jnp.maximum(h2 + b2_ref[...], 0.0)
    # Layer 3 (out_features = 1): VPU broadcast-multiply + lane reduction in f32,
    # avoiding an N=1 MXU push; b3 is a scalar read from SMEM.
    out = jnp.sum(h2 * w3_ref[...], axis=-1) + b3_ref[0, 0]        # (tb,)
    # Lane-dense store: batch lives on the lanes of the (1, 1, tb) output block.
    # TODO(synk): confirm this sublane->lane relayout stays on the XLU for large tb
    # (pl.lower_as_mlir); if it ever scalarizes, reduce in 128-row chunks instead.
    o_ref[...] = out.reshape(o_ref.shape).astype(o_ref.dtype)


def _round_up(n, m):
    return ((n + m - 1) // m) * m


def _pick_tiling(batch):
    """Pick (tb, grid_n) for the batch axis.

    * tb is a multiple of 128 -> lane-dense (1,1,tb) output block (no masked
      stores) and bf16-sublane-aligned x tile.
    * tb capped at _TB_CAP so per-grid-step overhead is amortized while the
      x tile stays a couple of MiB.
    * grid_n >= 2 for batches > 128 so the "parallel" axis shards across v7x's
      two TensorCores (harmless single extra step on 1-TC v5e/v6e).
    """
    min_steps = 2 if batch > 128 else 1
    grid_n = max(pl.cdiv(batch, _TB_CAP), min_steps)
    tb = _round_up(pl.cdiv(batch, grid_n), 128)
    grid_n = pl.cdiv(batch, tb)
    return tb, grid_n


def _vmem_limit_bytes(tb, x_dim, n_h, mx_itemsize):
    """Derived VMEM budget, clamped by the generation's physical capacity."""
    f32 = 4
    need = (2 * tb * x_dim * mx_itemsize                     # double-buffered x tile
            + 2 * tb * f32                                   # double-buffered out slab
            + 4 * tb * n_h * f32                             # h1/h2 + temporaries
            + 2 * (x_dim * n_h + n_h * n_h) * mx_itemsize    # resident weights (2 bufs)
            + 2 * 3 * n_h * f32                              # resident biases / w3 row
            + (2 << 20))                                     # headroom
    try:
        phys = pltpu.get_tpu_info().vmem_capacity_bytes      # 128 MiB v5e/v6e, 64 MiB v7x
    except Exception:                                        # conservative fallback
        phys = 64 << 20
    ceiling = min((phys * 3) // 4, 96 << 20)                 # ~48 MiB v7x, ~96 MiB v5e/v6e
    return int(min(max(need, 16 << 20), ceiling))


@functools.partial(jax.jit, static_argnames=("tb", "use_bf16"))
def generator_forward(x, params, *, tb=None, use_bf16=True):
    """Fused MLP forward. x: (B, x_dim) float32 -> (B, 1) float32."""
    w1, b1, w2, b2, w3, b3 = (
        params["w1"], params["b1"], params["w2"],
        params["b2"], params["w3"], params["b3"],
    )
    B, x_dim = x.shape
    n_h = w1.shape[1]

    if tb is None:
        tb, grid_n = _pick_tiling(B)
    else:
        assert tb % 128 == 0, "batch tile must be a multiple of 128 (lane-dense output)"
        grid_n = pl.cdiv(B, tb)
    b_pad = tb * grid_n

    # Pad odd / non-tile-aligned batches instead of a full-batch-tile fallback.
    x_in = x if b_pad == B else jnp.pad(x, ((0, b_pad - B), (0, 0)))

    # bf16 operands for the MXU (f32 accumulation inside the kernel); VPU math
    # (bias/ReLU/layer-3) stays f32.  Small numeric delta vs the f32 reference.
    mx_dtype = jnp.bfloat16 if use_bf16 else x.dtype
    x_in = x_in.astype(mx_dtype)
    w1_in = w1.astype(mx_dtype)
    w2_in = w2.astype(mx_dtype)
    w3_row = w3.reshape(1, n_h).astype(jnp.float32)   # layer-3 is VPU work: keep f32
    b3_s = b3.reshape(1, 1).astype(jnp.float32)

    def resident(shape):
        # Tiny weight/bias block with a constant index map -> stays VMEM-resident.
        # TODO(synk): pipeline_mode=pl.Buffered(1) would drop the dead second buffer
        # (~25 KB total) once single-buffer inputs are verified on this jax version.
        return pl.BlockSpec(shape, lambda i: tuple(0 for _ in shape),
                            memory_space=pltpu.MemorySpace.VMEM)

    out3d = pl.pallas_call(
        _mlp_kernel,
        out_shape=jax.ShapeDtypeStruct((grid_n, 1, tb), jnp.float32),
        grid_spec=pltpu.PrefetchScalarGridSpec(
            num_scalar_prefetch=0,
            grid=(grid_n,),
            in_specs=[
                pl.BlockSpec((tb, x_dim), lambda i: (i, 0)),        # x: tiled over batch
                resident(w1_in.shape),
                resident(b1.shape),
                resident(w2_in.shape),
                resident(b2.shape),
                resident(w3_row.shape),
                pl.BlockSpec(memory_space=pltpu.MemorySpace.SMEM),  # b3 scalar in SMEM
            ],
            out_specs=pl.BlockSpec((1, 1, tb), lambda i: (i, 0, 0)),
        ),
        compiler_params=pltpu.CompilerParams(
            dimension_semantics=("parallel",),   # batch axis shards across TCs (v7x)
            vmem_limit_bytes=_vmem_limit_bytes(
                tb, x_dim, n_h, jnp.dtype(mx_dtype).itemsize),
        ),
    )(x_in, w1_in, b1, w2_in, b2, w3_row, b3_s)

    return out3d.reshape(b_pad, 1)[:B]


def init_generator_params(key, x_dim, n_h=64):
    """Deterministic init mimicking PyTorch nn.Linear default (U[-1/sqrt(fan_in), +])."""
    ks = jax.random.split(key, 6)

    def linear(kw, kb, fan_in, fan_out):
        bound = 1.0 / jnp.sqrt(fan_in)
        w = jax.random.uniform(kw, (fan_in, fan_out), jnp.float32, -bound, bound)
        b = jax.random.uniform(kb, (1, fan_out), jnp.float32, -bound, bound)
        return w, b

    w1, b1 = linear(ks[0], ks[1], x_dim, n_h)
    w2, b2 = linear(ks[2], ks[3], n_h, n_h)
    w3, b3 = linear(ks[4], ks[5], n_h, 1)
    return {"w1": w1, "b1": b1, "w2": w2, "b2": b2, "w3": w3, "b3": b3}


def _reference_forward(x, p, mx_dtype=jnp.float32):
    """Pure-JAX reference; mx_dtype mirrors the kernel's MXU-operand dtype."""
    h1 = jnp.maximum(
        jnp.dot(x.astype(mx_dtype), p["w1"].astype(mx_dtype),
                preferred_element_type=jnp.float32) + p["b1"], 0.0)
    h2 = jnp.maximum(
        jnp.dot(h1.astype(mx_dtype), p["w2"].astype(mx_dtype),
                preferred_element_type=jnp.float32) + p["b2"], 0.0)
    return jnp.sum(h2 * p["w3"].reshape(1, -1), axis=-1, keepdims=True) + p["b3"]


if __name__ == "__main__":
    key = jax.random.PRNGKey(0)
    k_param, k_x = jax.random.split(key)

    B, x_dim, n_h = 8, 32, 64
    params = init_generator_params(k_param, x_dim, n_h)
    x = jax.random.normal(k_x, (B, x_dim), dtype=jnp.float32)

    out = jax.block_until_ready(generator_forward(x, params))
    assert out.shape == (B, 1), out.shape

    # Tight check vs a reference using identical bf16-operand / f32-accumulate math.
    ref_bf16 = _reference_forward(x, params, mx_dtype=jnp.bfloat16)
    assert jnp.allclose(out, ref_bf16, atol=2e-3, rtol=2e-3), "mismatch vs bf16 reference"
    # Loose sanity check vs the full-f32 PyTorch-equivalent reference (bf16 MXU delta).
    ref_f32 = _reference_forward(x, params, mx_dtype=jnp.float32)
    assert jnp.allclose(out, ref_f32, atol=5e-2, rtol=5e-2), "mismatch vs f32 reference"

    print("KERNEL_OK")
</pallas_src>

<mosaic_0001>
module attributes {stable_mosaic.version = 11 : i64} {
  func.func @_mlp_kernel(%arg0: i32, %arg1: memref<128x32xbf16, #tpu.memory_space<vmem>>, %arg2: memref<32x64xbf16, #tpu.memory_space<vmem>>, %arg3: memref<1x64xf32, #tpu.memory_space<vmem>>, %arg4: memref<64x64xbf16, #tpu.memory_space<vmem>>, %arg5: memref<1x64xf32, #tpu.memory_space<vmem>>, %arg6: memref<1x64xf32, #tpu.memory_space<vmem>>, %arg7: memref<1x1xf32, #tpu.memory_space<smem>>, %arg8: memref<1x1x128xf32, #tpu.memory_space<vmem>>) attributes {dimension_semantics = [#tpu.dimension_semantics<parallel>], iteration_bounds = array<i64: 1>, scalar_prefetch = 0 : i64, scratch_operands = 0 : i64, tpu.core_type = #tpu.core_type<tc>, window_params = [{transform_indices = @transform_0, window_bounds = array<i64: 128, 32>}, {pipeline_mode = #tpu.pipeline_mode<synchronous>, transform_indices = @transform_1, window_bounds = array<i64: 32, 64>}, {pipeline_mode = #tpu.pipeline_mode<synchronous>, transform_indices = @transform_2, window_bounds = array<i64: 1, 64>}, {pipeline_mode = #tpu.pipeline_mode<synchronous>, transform_indices = @transform_3, window_bounds = array<i64: 64, 64>}, {pipeline_mode = #tpu.pipeline_mode<synchronous>, transform_indices = @transform_4, window_bounds = array<i64: 1, 64>}, {pipeline_mode = #tpu.pipeline_mode<synchronous>, transform_indices = @transform_5, window_bounds = array<i64: 1, 64>}, {transform_indices = @transform_6, window_bounds = array<i64: 1, 1>}, {transform_indices = @transform_7, window_bounds = array<i64: 1, 1, 128>}]} {
    %c0 = arith.constant 0 : index
    %c0_0 = arith.constant 0 : index
    %0 = vector.load %arg1[%c0, %c0_0] : memref<128x32xbf16, #tpu.memory_space<vmem>>, vector<128x32xbf16>
    %c0_1 = arith.constant 0 : index
    %c0_2 = arith.constant 0 : index
    %1 = vector.load %arg2[%c0_1, %c0_2] : memref<32x64xbf16, #tpu.memory_space<vmem>>, vector<32x64xbf16>
    %cst = arith.constant dense<0.000000e+00> : vector<128x64xf32>
    %2 = tpu.matmul %0, %1, %cst {dimension_numbers = #tpu.dot_dimension_numbers<[1], [0], [0], [1], [0, 0, 1, 1], [], []>} : vector<128x32xbf16>, vector<32x64xbf16>, vector<128x64xf32> -> vector<128x64xf32>
    %c0_3 = arith.constant 0 : index
    %c0_4 = arith.constant 0 : index
    %3 = vector.load %arg3[%c0_3, %c0_4] : memref<1x64xf32, #tpu.memory_space<vmem>>, vector<1x64xf32>
    %4 = vector.broadcast %3 : vector<1x64xf32> to vector<128x64xf32>
    %5 = arith.addf %2, %4 : vector<128x64xf32>
    %cst_5 = arith.constant 0.000000e+00 : f32
    %6 = vector.broadcast %cst_5 : f32 to vector<128x64xf32>
    %7 = arith.maximumf %5, %6 : vector<128x64xf32>
    %8 = arith.truncf %7 : vector<128x64xf32> to vector<128x64xbf16>
    %c0_6 = arith.constant 0 : index
    %c0_7 = arith.constant 0 : index
    %9 = vector.load %arg4[%c0_6, %c0_7] : memref<64x64xbf16, #tpu.memory_space<vmem>>, vector<64x64xbf16>
    %cst_8 = arith.constant dense<0.000000e+00> : vector<128x64xf32>
    %10 = tpu.matmul %8, %9, %cst_8 {dimension_numbers = #tpu.dot_dimension_numbers<[1], [0], [0], [1], [0, 0, 1, 1], [], []>} : vector<128x64xbf16>, vector<64x64xbf16>, vector<128x64xf32> -> vector<128x64xf32>
    %c0_9 = arith.constant 0 : index
    %c0_10 = arith.constant 0 : index
    %11 = vector.load %arg5[%c0_9, %c0_10] : memref<1x64xf32, #tpu.memory_space<vmem>>, vector<1x64xf32>
    %12 = vector.broadcast %11 : vector<1x64xf32> to vector<128x64xf32>
    %13 = arith.addf %10, %12 : vector<128x64xf32>
    %cst_11 = arith.constant 0.000000e+00 : f32
    %14 = vector.broadcast %cst_11 : f32 to vector<128x64xf32>
    %15 = arith.maximumf %13, %14 : vector<128x64xf32>
    %c0_12 = arith.constant 0 : index
    %c0_13 = arith.constant 0 : index
    %16 = vector.load %arg6[%c0_12, %c0_13] : memref<1x64xf32, #tpu.memory_space<vmem>>, vector<1x64xf32>
    %17 = vector.broadcast %16 : vector<1x64xf32> to vector<128x64xf32>
    %18 = arith.mulf %15, %17 : vector<128x64xf32>
    %cst_14 = arith.constant dense<0.000000e+00> : vector<128xf32>
    %19 = vector.multi_reduction <add>, %18, %cst_14 [1] : vector<128x64xf32> to vector<128xf32>
    %c0_15 = arith.constant 0 : index
    %c0_16 = arith.constant 0 : index
    %20 = memref.load %arg7[%c0_15, %c0_16] : memref<1x1xf32, #tpu.memory_space<smem>>
    %21 = vector.broadcast %20 : f32 to vector<128xf32>
    %22 = arith.addf %19, %21 : vector<128xf32>
    %23 = vector.shape_cast %22 : vector<128xf32> to vector<1x1x128xf32>
    %c0_17 = arith.constant 0 : index
    %c0_18 = arith.constant 0 : index
    %c0_19 = arith.constant 0 : index
    %24 = vector.load %arg8[%c0_17, %c0_18, %c0_19] : memref<1x1x128xf32, #tpu.memory_space<vmem>>, vector<1x1x128xf32>
    tpu.vector_store %arg8[%c0_17, %c0_18, %c0_19], %23 {strides = array<i32>} : memref<1x1x128xf32, #tpu.memory_space<vmem>>, vector<1x1x128xf32>,
    return
  }
  func.func @transform_0(%arg0: i32) -> (i32, i32) {
    %c0_i32 = arith.constant 0 : i32
    %c0_i32_0 = arith.constant 0 : i32
    return %arg0, %c0_i32 : i32, i32
  }
  func.func @transform_1(%arg0: i32) -> (i32, i32) {
    %c0_i32 = arith.constant 0 : i32
    %c0_i32_0 = arith.constant 0 : i32
    %c0_i32_1 = arith.constant 0 : i32
    return %c0_i32, %c0_i32_0 : i32, i32
  }
  func.func @transform_2(%arg0: i32) -> (i32, i32) {
    %c0_i32 = arith.constant 0 : i32
    %c0_i32_0 = arith.constant 0 : i32
    %c0_i32_1 = arith.constant 0 : i32
    return %c0_i32, %c0_i32_0 : i32, i32
  }
  func.func @transform_3(%arg0: i32) -> (i32, i32) {
    %c0_i32 = arith.constant 0 : i32
    %c0_i32_0 = arith.constant 0 : i32
    %c0_i32_1 = arith.constant 0 : i32
    return %c0_i32, %c0_i32_0 : i32, i32
  }
  func.func @transform_4(%arg0: i32) -> (i32, i32) {
    %c0_i32 = arith.constant 0 : i32
    %c0_i32_0 = arith.constant 0 : i32
    %c0_i32_1 = arith.constant 0 : i32
    return %c0_i32, %c0_i32_0 : i32, i32
  }
  func.func @transform_5(%arg0: i32) -> (i32, i32) {
    %c0_i32 = arith.constant 0 : i32
    %c0_i32_0 = arith.constant 0 : i32
    %c0_i32_1 = arith.constant 0 : i32
    return %c0_i32, %c0_i32_0 : i32, i32
  }
  func.func @transform_6(%arg0: i32) -> (i32, i32) {
    %c0_i32 = arith.constant 0 : i32
    %c0_i32_0 = arith.constant 0 : i32
    %c0_i32_1 = arith.constant 0 : i32
    return %c0_i32, %c0_i32_0 : i32, i32
  }
  func.func @transform_7(%arg0: i32) -> (i32, i32, i32) {
    %c0_i32 = arith.constant 0 : i32
    %c0_i32_0 = arith.constant 0 : i32
    %c0_i32_1 = arith.constant 0 : i32
    return %arg0, %c0_i32, %c0_i32_0 : i32, i32, i32
  }
}

</mosaic_0001>

<bundles_post_ra>
// kernel: generator_forward.1
= control target key start
LH: loop header
LB: loop body
LE: loop exit
PB: predicated region body
PF: predicated region fallthrough
CT: control target
= control target key end

     0   :  { %vm104_vm0 = vcmask 261120   ;;  %vm238_vm1 = vcmask 523264   ;;  %vm435_vm2 = vcmask 130112   ;;  %vm439_vm3 = vcmask 195712   ;;  %s802_s1 = inlined_call_operand.vmem [shape: bf16[32,64], index: 1, kind: input, shape index: {}]   ;;  %s803_s2 = inlined_call_operand.vmem [shape: f32[1,64], index: 2, kind: input, shape index: {}]   ;;  %s804_s0 = inlined_call_operand.vmem [shape: bf16[128,32], index: 0, kind: input, shape index: {}]   ;;  %s805_s3 = inlined_call_operand.vmem [shape: bf16[64,64], index: 3, kind: input, shape index: {}]   ;;  %s806_s4 = inlined_call_operand.vmem [shape: f32[1,64], index: 4, kind: input, shape index: {}]   ;;  %s807_s5 = inlined_call_operand.vmem [shape: f32[1,64], index: 5, kind: input, shape index: {}]   ;;  %s808_s6 = inlined_call_operand.<no memory space> [shape: f32[1,1], index: 6, kind: input, shape index: {}]   ;;  %s809_s7 = inlined_call_operand.vmem [shape: f32[1,1,128], index: 7, kind: output, shape index: {}]  }
   0x1   :  { %v580_v0 = vld [vmem:[%s802_s1 + $0x8] sm:$0xff]  ;;  %v579_v1 = vld [vmem:[%s802_s1] sm:$0xff]  ;;  %v573_v4 = vld [vmem:[%s804_s0 + $0x10] sm:$0xff]  ;;  %vm443_vm4 = vcmask 261312   ;;  %vm447_vm5 = vcmask 326912   ;;  %vm451_vm6 = vcmask 392512  }
   0x2   :  { %135 = vmatpush.bf16.msra.mxu0 %v580_v0  ;;  %585 = vmatpush.bf16.msra.mxu3 %v580_v0  ;;  %v571_v2 = vld [vmem:[%s804_s0] sm:$0xff]  ;;  %v572_v3 = vld [vmem:[%s804_s0 + $0x8] sm:$0xff]  ;;  %v574_v6 = vld [vmem:[%s804_s0 + $0x18] sm:$0xff]  ;;  %vm455_vm7 = vcmask 458112   ;;  %vm459_vm8 = vcmask 523712   ;;  %vm463_vm9 = vcmask 589312  }
   0x3   :  { %v576_v5 = vld [vmem:[%s804_s0 + $0x28] sm:$0xff]  ;;  %v577_v7 = vld [vmem:[%s804_s0 + $0x30] sm:$0xff]  ;;  %v575_v8 = vld [vmem:[%s804_s0 + $0x20] sm:$0xff]  ;;  %vm467_vm10 = vcmask 654912   ;;  %vm471_vm11 = vcmask 720512   ;;  %vm475_vm12 = vcmask 786112  }
   0x4   :  { %v578_v9 = vld [vmem:[%s804_s0 + $0x38] sm:$0xff]  ;;  %v583_v11 = vld [vmem:[%s805_s3 + $0x10] sm:$0xff]  ;;  %v582_v12 = vld [vmem:[%s805_s3 + $0x8] sm:$0xff]  ;;  %vm479_vm13 = vcmask 851712   ;;  %vm483_vm14 = vcmask 917312   ;;  %vm487_vm15 = vcmask 982912  }
   0x5   :  { %v584_v10 = vld [vmem:[%s805_s3 + $0x18] sm:$0xff]  ;;  %v581_v13 = vld [vmem:[%s805_s3] sm:$0xff] }
   0x6   :  { %136 = vmatpush.bf16.msra.mxu0 %v579_v1  ;;  %586 = vmatpush.bf16.msra.mxu3 %v579_v1  ;;  %v591_v15 = vld [vmem:[%s803_s2] ss:$0 sm:$0xff] }
   0x7   :  { %267 = vmatpush.bf16.msra.mxu1 %v584_v10  ;;  %587 = vmatpush.bf16.msra.mxu2 %v584_v10  ;;  %v704_v10 = vld [vmem:[%s807_s5] ss:$0 sm:$0xff] }
   0x9   :  { %539 = vmatmul.msk.bf16.vlgmr.msra.gmra.mxu0 %vm104_vm0, %v571_v2  ;;  %544 = vmatmul.msk.bf16.vlgmr.msra.gmra.mxu3 %vm104_vm0, %v576_v5 }
   0xb   :  { %268 = vmatpush.bf16.msra.mxu1 %v583_v11  ;;  %588 = vmatpush.bf16.msra.mxu2 %v583_v11 }
   0xf   :  { %269 = vmatpush.bf16.msra.mxu1 %v582_v12  ;;  %589 = vmatpush.bf16.msra.mxu2 %v582_v12 }
  0x13   :  { %270 = vmatpush.bf16.msra.mxu1 %v581_v13  ;;  %590 = vmatpush.bf16.msra.mxu2 %v581_v13 }
  0x19   :  { %540 = vmatmul.msk.bf16.gmra.mxu0 %vm104_vm0, %v572_v3  ;;  %545 = vmatmul.msk.bf16.gmra.mxu3 %vm104_vm0, %v577_v7  ;;  %v698_v7 = vld [vmem:[%s806_s4] ss:$0 sm:$0xff] }
  0x29   :  { %541 = vmatmul.msk.bf16.gmra.mxu0 %vm104_vm0, %v573_v4  ;;  %546 = vmatmul.msk.bf16.gmra.mxu3 %vm104_vm0, %v578_v9 }
  0x39   :  { %542 = vmatmul.msk.bf16.gmra.mxu0 %vm104_vm0, %v574_v6 }
  0x49   :  { %543 = vmatmul.msk.bf16.gmra.mxu0 %vm104_vm0, %v575_v8  ;;  %vm491_vm0 = vcmask 1048512  }
  0x86   :  { %v138_v14 = vpop.f32.mrf.mxu0 }
  0x87   :  { %v139_v16 = vadd.f32 %v591_v15, %v138_v14 }
  0x89   :  { %v178_v19 = vmax.f32 %v139_v16, 0.0 }
  0x8c   :  { %v163_v44 = vpop.f32.mrf.mxu3 }
  0x8d   :  { %v164_v53 = vadd.f32 %v591_v15, %v163_v44 }
  0x8e   :  { %v140_v17 = vpop.f32.mrf.mxu0 }
  0x8f   :  { %v141_v18 = vadd.f32 %v591_v15, %v140_v17  ;;  %v188_v55 = vmax.f32 %v164_v53, 0.0 }
  0x91   :  { %v179_v20 = vmax.f32 %v141_v18, 0.0 }
  0x93   :  { %v194_v21 = vpack.c.bf16 %v179_v20, %v178_v19 }
  0x94   :  { %v165_v48 = vpop.f32.mrf.mxu3 }
  0x95   :  { %563 = vmatmul.msk.bf16.vlgmr.msra.gmra.mxu1 %vm238_vm1, %v194_v21  ;;  %v166_v54 = vadd.f32 %v591_v15, %v165_v48 }
  0x96   :  { %v143_v22 = vpop.f32.mrf.mxu0 }
  0x97   :  { %v144_v23 = vadd.f32 %v591_v15, %v143_v22  ;;  %v189_v56 = vmax.f32 %v166_v54, 0.0 }
  0x99   :  { %v180_v26 = vmax.f32 %v144_v23, 0.0  ;;  %v199_v57 = vpack.c.bf16 %v189_v56, %v188_v55 }
  0x9c   :  { %v168_v52 = vpop.f32.mrf.mxu3 }
  0x9d   :  { %v169_v59 = vadd.f32 %v591_v15, %v168_v52 }
  0x9e   :  { %v145_v24 = vpop.f32.mrf.mxu0 }
  0x9f   :  { %v146_v25 = vadd.f32 %v591_v15, %v145_v24  ;;  %v190_v62 = vmax.f32 %v169_v59, 0.0 }
  0xa1   :  { %v181_v27 = vmax.f32 %v146_v25, 0.0 }
  0xa3   :  { %v195_v28 = vpack.c.bf16 %v181_v27, %v180_v26 }
  0xa4   :  { %v170_v58 = vpop.f32.mrf.mxu3 }
  0xa5   :  { %564 = vmatmul.msk.bf16.gmra.mxu1 %vm238_vm1, %v195_v28  ;;  %v171_v60 = vadd.f32 %v591_v15, %v170_v58 }
  0xa6   :  { %v148_v29 = vpop.f32.mrf.mxu0 }
  0xa7   :  { %v149_v30 = vadd.f32 %v591_v15, %v148_v29  ;;  %v191_v63 = vmax.f32 %v171_v60, 0.0 }
  0xa9   :  { %v182_v33 = vmax.f32 %v149_v30, 0.0  ;;  %v200_v0 = vpack.c.bf16 %v191_v63, %v190_v62 }
  0xac   :  { %v173_v61 = vpop.f32.mrf.mxu3 }
  0xad   :  { %v174_v2 = vadd.f32 %v591_v15, %v173_v61 }
  0xae   :  { %v150_v31 = vpop.f32.mrf.mxu0 }
  0xaf   :  { %v151_v32 = vadd.f32 %v591_v15, %v150_v31  ;;  %v192_v4 = vmax.f32 %v174_v2, 0.0 }
  0xb1   :  { %v183_v34 = vmax.f32 %v151_v32, 0.0 }
  0xb3   :  { %v196_v35 = vpack.c.bf16 %v183_v34, %v182_v33 }
  0xb4   :  { %v175_v1 = vpop.f32.mrf.mxu3 }
  0xb5   :  { %565 = vmatmul.msk.bf16.gmra.mxu1 %vm238_vm1, %v196_v35  ;;  %v176_v3 = vadd.f32 %v591_v15, %v175_v1 }
  0xb6   :  { %v153_v36 = vpop.f32.mrf.mxu0 }
  0xb7   :  { %v154_v37 = vadd.f32 %v591_v15, %v153_v36  ;;  %v193_v5 = vmax.f32 %v176_v3, 0.0 }
  0xb9   :  { %v184_v40 = vmax.f32 %v154_v37, 0.0  ;;  %v201_v6 = vpack.c.bf16 %v193_v5, %v192_v4 }
  0xbe   :  { %v155_v38 = vpop.f32.mrf.mxu0 }
  0xbf   :  { %v156_v39 = vadd.f32 %v591_v15, %v155_v38 }
  0xc1   :  { %v185_v41 = vmax.f32 %v156_v39, 0.0 }
  0xc3   :  { %v197_v42 = vpack.c.bf16 %v185_v41, %v184_v40 }
  0xc5   :  { %566 = vmatmul.msk.bf16.gmra.mxu1 %vm238_vm1, %v197_v42 }
  0xc6   :  { %v158_v43 = vpop.f32.mrf.mxu0 }
  0xc7   :  { %v159_v45 = vadd.f32 %v591_v15, %v158_v43 }
  0xc9   :  { %v186_v49 = vmax.f32 %v159_v45, 0.0 }
  0xce   :  { %v160_v46 = vpop.f32.mrf.mxu0 }
  0xcf   :  { %v161_v47 = vadd.f32 %v591_v15, %v160_v46 }
  0xd1   :  { %v187_v50 = vmax.f32 %v161_v47, 0.0 }
  0xd3   :  { %v198_v51 = vpack.c.bf16 %v187_v50, %v186_v49 }
  0xd5   :  { %567 = vmatmul.msk.bf16.vlgmr.msra.gmra.mxu2 %vm238_vm1, %v198_v51 }
  0xe5   :  { %568 = vmatmul.msk.bf16.gmra.mxu2 %vm238_vm1, %v199_v57 }
  0xf5   :  { %569 = vmatmul.msk.bf16.gmra.mxu2 %vm238_vm1, %v200_v0 }
 0x105   :  { %570 = vmatmul.msk.bf16.gmra.mxu2 %vm238_vm1, %v201_v6 }
 0x112   :  { %v272_v8 = vpop.f32.mrf.mxu1 }
 0x113   :  { %v273_v9 = vadd.f32 %v698_v7, %v272_v8 }
 0x115   :  { %v312_v11 = vmax.f32 %v273_v9, 0.0 }
 0x117   :  { %v332_v12 = vmul.f32 %v704_v10, %v312_v11 }
 0x119   :  { %v348_v13 = vsel %vm238_vm1, %v332_v12, 0.0 }
 0x11a   :  { %v274_v14 = vpop.f32.mrf.mxu1  ;;  %349 = vadd.xlane.f32.xlu0 %v348_v13 }
 0x11b   :  { %v275_v15 = vadd.f32 %v698_v7, %v274_v14 }
 0x11d   :  { %v313_v16 = vmax.f32 %v275_v15, 0.0 }
 0x11f   :  { %v333_v17 = vmul.f32 %v704_v10, %v313_v16 }
 0x121   :  { %v351_v18 = vsel %vm238_vm1, %v333_v17, 0.0 }
 0x122   :  { %v277_v19 = vpop.f32.mrf.mxu1  ;;  %352 = vadd.xlane.f32.xlu0 %v351_v18 }
 0x123   :  { %v278_v20 = vadd.f32 %v698_v7, %v277_v19 }
 0x125   :  { %v314_v21 = vmax.f32 %v278_v20, 0.0 }
 0x127   :  { %v334_v22 = vmul.f32 %v704_v10, %v314_v21 }
 0x129   :  { %v354_v23 = vsel %vm238_vm1, %v334_v22, 0.0 }
 0x12a   :  { %v279_v24 = vpop.f32.mrf.mxu1  ;;  %355 = vadd.xlane.f32.xlu1 %v354_v23 }
 0x12b   :  { %v280_v25 = vadd.f32 %v698_v7, %v279_v24 }
 0x12d   :  { %v315_v26 = vmax.f32 %v280_v25, 0.0 }
 0x12f   :  { %v335_v27 = vmul.f32 %v704_v10, %v315_v26 }
 0x131   :  { %v357_v28 = vsel %vm238_vm1, %v335_v27, 0.0 }
 0x132   :  { %v282_v29 = vpop.f32.mrf.mxu1  ;;  %358 = vadd.xlane.f32.xlu1 %v357_v28 }
 0x133   :  { %v283_v30 = vadd.f32 %v698_v7, %v282_v29 }
 0x135   :  { %v316_v31 = vmax.f32 %v283_v30, 0.0 }
 0x137   :  { %v336_v32 = vmul.f32 %v704_v10, %v316_v31 }
 0x139   :  { %v360_v33 = vsel %vm238_vm1, %v336_v32, 0.0 }
 0x13a   :  { %v284_v34 = vpop.f32.mrf.mxu1  ;;  %361 = vadd.xlane.f32.xlu2 %v360_v33  ;;  %v430_v33 = vlaneseq }
 0x13b   :  { %v285_v35 = vadd.f32 %v698_v7, %v284_v34 }
 0x13d   :  { %v317_v36 = vmax.f32 %v285_v35, 0.0 }
 0x13f   :  { %v337_v37 = vmul.f32 %v704_v10, %v317_v36 }
 0x141   :  { %v363_v38 = vsel %vm238_vm1, %v337_v37, 0.0  ;;  %v753_v37 = vand.u32 127, %v430_v33 }
 0x142   :  { %v287_v39 = vpop.f32.mrf.mxu1  ;;  %364 = vadd.xlane.f32.xlu2 %v363_v38 }
 0x143   :  { %v288_v40 = vadd.f32 %v698_v7, %v287_v39  ;;  %v489_v33 = vadd.s32 4294967176, %v753_v37 }
 0x145   :  { %v318_v41 = vmax.f32 %v288_v40, 0.0  ;;  %v437_v40 = vadd.s32 4294967280, %v753_v37 }
 0x147   :  { %v338_v42 = vmul.f32 %v704_v10, %v318_v41 }
 0x149   :  { %v366_v43 = vsel %vm238_vm1, %v338_v42, 0.0  ;;  %v441_v42 = vadd.s32 4294967272, %v753_v37 }
 0x14a   :  { %v289_v44 = vpop.f32.mrf.mxu1  ;;  %367 = vadd.xlane.f32.xlu0 %v366_v43 }
 0x14b   :  { %v290_v45 = vadd.f32 %v698_v7, %v289_v44 }
 0x14d   :  { %v319_v46 = vmax.f32 %v290_v45, 0.0 }
 0x14f   :  { %v339_v47 = vmul.f32 %v704_v10, %v319_v46 }
 0x151   :  { %v369_v48 = vsel %vm238_vm1, %v339_v47, 0.0  ;;  %v445_v47 = vadd.s32 4294967264, %v753_v37 }
 0x152   :  { %370 = vadd.xlane.f32.xlu1 %v369_v48 }
 0x158   :  { %v292_v49 = vpop.f32.mrf.mxu2 }
 0x159   :  { %v293_v50 = vadd.f32 %v698_v7, %v292_v49 }
 0x15b   :  { %v320_v51 = vmax.f32 %v293_v50, 0.0 }
 0x15d   :  { %v340_v52 = vmul.f32 %v704_v10, %v320_v51 }
 0x15f   :  { %v372_v53 = vsel %vm238_vm1, %v340_v52, 0.0 }
 0x160   :  { %v294_v54 = vpop.f32.mrf.mxu2  ;;  %373 = vadd.xlane.f32.xlu2 %v372_v53  ;;  %v449_v53 = vadd.s32 4294967256, %v753_v37 }
 0x161   :  { %v295_v55 = vadd.f32 %v698_v7, %v294_v54 }
 0x163   :  { %v321_v56 = vmax.f32 %v295_v55, 0.0 }
 0x165   :  { %v341_v57 = vmul.f32 %v704_v10, %v321_v56  ;;  %v453_v56 = vadd.s32 4294967248, %v753_v37 }
 0x167   :  { %v375_v58 = vsel %vm238_vm1, %v341_v57, 0.0 }
 0x168   :  { %v297_v59 = vpop.f32.mrf.mxu2  ;;  %376 = vadd.xlane.f32.xlu0 %v375_v58 }
 0x169   :  { %v298_v60 = vadd.f32 %v698_v7, %v297_v59  ;;  %v457_v59 = vadd.s32 4294967240, %v753_v37 }
 0x16b   :  { %v322_v61 = vmax.f32 %v298_v60, 0.0 }
 0x16d   :  { %v342_v62 = vmul.f32 %v704_v10, %v322_v61 }
 0x16f   :  { %v378_v63 = vsel %vm238_vm1, %v342_v62, 0.0  ;;  %v461_v62 = vadd.s32 4294967232, %v753_v37 }
 0x170   :  { %v299_v0 = vpop.f32.mrf.mxu2  ;;  %379 = vadd.xlane.f32.xlu1 %v378_v63 }
 0x171   :  { %v300_v1 = vadd.f32 %v698_v7, %v299_v0 }
 0x173   :  { %v323_v2 = vmax.f32 %v300_v1, 0.0 }
 0x175   :  { %v343_v3 = vmul.f32 %v704_v10, %v323_v2  ;;  %v465_v2 = vadd.s32 4294967224, %v753_v37 }
 0x177   :  { %v381_v4 = vsel %vm238_vm1, %v343_v3, 0.0 }
 0x178   :  { %v302_v5 = vpop.f32.mrf.mxu2  ;;  %382 = vadd.xlane.f32.xlu2 %v381_v4 }
 0x179   :  { %v303_v6 = vadd.f32 %v698_v7, %v302_v5 }
 0x17b   :  { %v324_v8 = vmax.f32 %v303_v6, 0.0  ;;  %v469_v6 = vadd.s32 4294967216, %v753_v37 }
 0x17d   :  { %v344_v9 = vmul.f32 %v704_v10, %v324_v8 }
 0x17f   :  { %v384_v11 = vsel %vm238_vm1, %v344_v9, 0.0 }
 0x180   :  { %v304_v12 = vpop.f32.mrf.mxu2  ;;  %385 = vadd.xlane.f32.xlu0 %v384_v11 }
 0x181   :  { %v305_v13 = vadd.f32 %v698_v7, %v304_v12 }
 0x183   :  { %v325_v14 = vmax.f32 %v305_v13, 0.0  ;;  %v473_v13 = vadd.s32 4294967208, %v753_v37 }
 0x185   :  { %v345_v15 = vmul.f32 %v704_v10, %v325_v14 }
 0x187   :  { %v387_v16 = vsel %vm238_vm1, %v345_v15, 0.0 }
 0x188   :  { %v307_v17 = vpop.f32.mrf.mxu2  ;;  %388 = vadd.xlane.f32.xlu1 %v387_v16 }
 0x189   :  { %v308_v18 = vadd.f32 %v698_v7, %v307_v17  ;;  %v477_v17 = vadd.s32 4294967200, %v753_v37 }
 0x18b   :  { %v326_v19 = vmax.f32 %v308_v18, 0.0 }
 0x18d   :  { %v346_v20 = vmul.f32 %v704_v10, %v326_v19  ;;  %v350_v27 = vpop.xlane.xlu0 %349 }
 0x18f   :  { %v390_v21 = vsel %vm238_vm1, %v346_v20, 0.0 }
 0x190   :  { %v309_v22 = vpop.f32.mrf.mxu2  ;;  %391 = vadd.xlane.f32.xlu2 %v390_v21  ;;  %v481_v21 = vadd.s32 4294967192, %v753_v37 }
 0x191   :  { %v310_v23 = vadd.f32 %v698_v7, %v309_v22  ;;  %v758_v7 = vstv %s808_s6 }
 0x192   :  { %v398_v39 = vadd.f32 %v758_v7, %v350_v27 }
 0x193   :  { %v327_v24 = vmax.f32 %v310_v23, 0.0 }
 0x194   :  { %v432_v50 = vperm.slane %v398_v39, %v753_v37 }
 0x195   :  { %v347_v25 = vmul.f32 %v704_v10, %v327_v24  ;;  %v353_v30 = vpop.xlane.xlu0 %352  ;;  %v433_v10 = vadd.s32 4294967288, %v753_v37 }
 0x196   :  { %v399_v38 = vadd.f32 %v758_v7, %v353_v30 }
 0x197   :  { %v393_v26 = vsel %vm238_vm1, %v347_v25, 0.0  ;;  %v485_v25 = vadd.s32 4294967184, %v753_v37 }
 0x198   :  { %394 = vadd.xlane.f32.xlu0 %v393_v26  ;;  %v434_v45 = vperm.slane %v399_v38, %v433_v10 }
 0x19a   :  { %v436_v55 = vsel %vm435_vm2, %v434_v45, %v432_v50 }
 0x19d   :  { %v356_v28 = vpop.xlane.xlu1 %355 }
 0x19e   :  { %v400_v41 = vadd.f32 %v758_v7, %v356_v28 }
 0x1a0   :  { %v438_v51 = vperm.slane %v400_v41, %v437_v40 }
 0x1a2   :  { %v440_v61 = vsel %vm439_vm3, %v438_v51, %v436_v55 }
 0x1a5   :  { %v359_v31 = vpop.xlane.xlu1 %358 }
 0x1a6   :  { %v401_v43 = vadd.f32 %v758_v7, %v359_v31 }
 0x1a8   :  { %v442_v52 = vperm.slane %v401_v43, %v441_v42 }
 0x1aa   :  { %v444_v0 = vsel %vm443_vm4, %v442_v52, %v440_v61 }
 0x1ad   :  { %v362_v29 = vpop.xlane.xlu2 %361 }
 0x1ae   :  { %v402_v48 = vadd.f32 %v758_v7, %v362_v29 }
 0x1b0   :  { %v446_v58 = vperm.slane %v402_v48, %v445_v47 }
 0x1b2   :  { %v448_v11 = vsel %vm447_vm5, %v446_v58, %v444_v0 }
 0x1b5   :  { %v365_v32 = vpop.xlane.xlu2 %364 }
 0x1b6   :  { %v403_v54 = vadd.f32 %v758_v7, %v365_v32 }
 0x1b8   :  { %v450_v1 = vperm.slane %v403_v54, %v449_v53 }
 0x1ba   :  { %v452_v19 = vsel %vm451_vm6, %v450_v1, %v448_v11 }
 0x1bd   :  { %v368_v34 = vpop.xlane.xlu0 %367 }
 0x1be   :  { %v404_v57 = vadd.f32 %v758_v7, %v368_v34 }
 0x1c0   :  { %v454_v5 = vperm.slane %v404_v57, %v453_v56 }
 0x1c2   :  { %v456_v23 = vsel %vm455_vm7, %v454_v5, %v452_v19 }
 0x1c5   :  { %v371_v35 = vpop.xlane.xlu1 %370 }
 0x1c6   :  { %v405_v60 = vadd.f32 %v758_v7, %v371_v35 }
 0x1c8   :  { %v458_v12 = vperm.slane %v405_v60, %v457_v59 }
 0x1ca   :  { %v460_v27 = vsel %vm459_vm8, %v458_v12, %v456_v23 }
 0x1d3   :  { %v374_v36 = vpop.xlane.xlu2 %373 }
 0x1d4   :  { %v406_v63 = vadd.f32 %v758_v7, %v374_v36 }
 0x1d6   :  { %v462_v16 = vperm.slane %v406_v63, %v461_v62 }
 0x1d8   :  { %v464_v29 = vsel %vm463_vm9, %v462_v16, %v460_v27 }
 0x1db   :  { %v377_v44 = vpop.xlane.xlu0 %376 }
 0x1dc   :  { %v407_v3 = vadd.f32 %v758_v7, %v377_v44 }
 0x1de   :  { %v466_v20 = vperm.slane %v407_v3, %v465_v2 }
 0x1e0   :  { %v468_v31 = vsel %vm467_vm10, %v466_v20, %v464_v29 }
 0x1e3   :  { %v380_v46 = vpop.xlane.xlu1 %379 }
 0x1e4   :  { %v408_v8 = vadd.f32 %v758_v7, %v380_v46 }
 0x1e6   :  { %v470_v24 = vperm.slane %v408_v8, %v469_v6 }
 0x1e8   :  { %v472_v34 = vsel %vm471_vm11, %v470_v24, %v468_v31 }
 0x1eb   :  { %v383_v49 = vpop.xlane.xlu2 %382 }
 0x1ec   :  { %v409_v14 = vadd.f32 %v758_v7, %v383_v49 }
 0x1ee   :  { %v474_v28 = vperm.slane %v409_v14, %v473_v13 }
 0x1f0   :  { %v476_v10 = vsel %vm475_vm12, %v474_v28, %v472_v34 }
 0x1f3   :  { %v386_v4 = vpop.xlane.xlu0 %385 }
 0x1f4   :  { %v410_v18 = vadd.f32 %v758_v7, %v386_v4 }
 0x1f6   :  { %v478_v30 = vperm.slane %v410_v18, %v477_v17 }
 0x1f8   :  { %v480_v39 = vsel %vm479_vm13, %v478_v30, %v476_v10 }
 0x1fb   :  { %v389_v9 = vpop.xlane.xlu1 %388 }
 0x1fc   :  { %v411_v22 = vadd.f32 %v758_v7, %v389_v9 }
 0x1fe   :  { %v482_v32 = vperm.slane %v411_v22, %v481_v21 }
 0x200   :  { %v484_v40 = vsel %vm483_vm14, %v482_v32, %v480_v39 }
 0x203   :  { %v392_v15 = vpop.xlane.xlu2 %391 }
 0x204   :  { %v412_v26 = vadd.f32 %v758_v7, %v392_v15 }
 0x206   :  { %v486_v35 = vperm.slane %v412_v26, %v485_v25 }
 0x208   :  { %v488_v42 = vsel %vm487_vm15, %v486_v35, %v484_v40 }
 0x20b   :  { %v395_v36 = vpop.xlane.xlu0 %394 }
 0x20c   :  { %v413_v38 = vadd.f32 %v758_v7, %v395_v36 }
 0x20e   :  { %v490_v41 = vperm.slane %v413_v38, %v489_v33 }
 0x210   :  { %v492_v43 = vsel %vm491_vm0, %v490_v41, %v488_v42 }
 0x211   :  { %494 = vst [vmem:[%s809_s7] sm:$0x1] %v492_v43 }

</bundles_post_ra>
